<compile_context>
chip_gen: v5e
topology: v5e:2x2
jax: 0.10.0
libtpu: 0.0.40
codegen_flags: <defaults>
</compile_context>

<pallas_src>
import functools

import jax
import jax.numpy as jnp
from jax import lax
from jax.experimental import pallas as pl
from jax.experimental.pallas import tpu as pltpu


# -----------------------------------------------------------------------------
# Pallas kernel: fused (W_sn @ patches^T) + bias + LeakyReLU(0.2)
# -----------------------------------------------------------------------------
def _conv_gemm_kernel(p_ref, w_ref, b_ref, o_ref):
    # p_ref: (K, TM)       bf16 im2col patch tile (M on lanes, streamed)
    # w_ref: (OC_pad, K)   bf16 flattened spectrally-normalized weight (resident)
    # b_ref: (OC_pad, 1)   f32 bias (resident)
    # o_ref: (OC_pad, TM)  f32 output tile (OC on sublanes, M lane-dense)
    acc = jnp.dot(w_ref[...], p_ref[...], preferred_element_type=jnp.float32)
    acc = acc + b_ref[...]
    o_ref[...] = jnp.where(acc >= 0.0, acc, 0.2 * acc).astype(o_ref.dtype)


def _cdiv(a, b):
    return -(-a // b)


def _round_up(x, m):
    return ((x + m - 1) // m) * m


def _tpu_limits():
    """(vmem_capacity_bytes, tensorcores_per_chip) with conservative fallbacks."""
    vmem_cap = 64 * 1024 * 1024   # v7x per-TC VMEM = smallest across v5e/v6e/v7x
    num_cores = 1
    try:
        info = pltpu.get_tpu_info()
        vmem_cap = int(getattr(info, "vmem_capacity_bytes", vmem_cap))
        for name in ("num_tensorcores", "tensorcore_count", "num_cores", "core_count"):
            val = getattr(info, name, None)
            if val:
                num_cores = int(val)
                break
    except Exception:
        pass
    return vmem_cap, num_cores


def _plan_tiles(M, K, oc_pad, vmem_cap, num_cores, tm_cap=4096):
    """Pick lane tile TM (multiple of 128), padded M, and grid length."""
    budget = int(0.6 * vmem_cap)                      # headroom for Mosaic scratch
    resident = oc_pad * K * 2 + oc_pad * 4            # weight + bias
    per_col = 2 * (K * 2) + 2 * (oc_pad * 4)          # dbl-buffered patch + out col
    tm_vmem = max(128, ((budget - resident) // max(per_col, 1)) // 128 * 128)
    tm_target = max(128, min(tm_cap, tm_vmem, _round_up(M, 128)))
    n_steps = _cdiv(M, tm_target)
    if num_cores > 1:
        # >= 2 grid steps per TensorCore (when M is big enough) so each core
        # keeps its patch DMA overlapped with compute on megacore parts.
        n_steps = max(n_steps, min(2 * num_cores, _cdiv(M, 128)))
    tm = _round_up(_cdiv(M, n_steps), 128)
    return tm, n_steps * tm, n_steps


def conv_gemm_pallas(patches_t, w_flat, bias, *, tm_cap=4096):
    """patches_t: (K, M) bf16, w_flat: (OC, K) f32, bias: (OC,) f32 -> (OC, M) f32."""
    K, M = patches_t.shape
    OC = w_flat.shape[0]
    oc_pad = _round_up(OC, 8)        # sublane granule; zero rows sliced off below

    vmem_cap, num_cores = _tpu_limits()
    tm, m_pad, n_steps = _plan_tiles(M, K, oc_pad, vmem_cap, num_cores, tm_cap)
    if m_pad != M:
        patches_t = jnp.pad(patches_t, ((0, 0), (0, m_pad - M)))

    w_p = jnp.zeros((oc_pad, K), jnp.bfloat16).at[:OC, :].set(
        w_flat.astype(jnp.bfloat16))
    b_p = jnp.zeros((oc_pad, 1), jnp.float32).at[:OC, 0].set(
        bias.astype(jnp.float32))

    # Real byte streams (incl. one wrapper-side pass over the real output).
    cost = pl.CostEstimate(
        flops=2 * M * K * OC,
        transcendentals=0,
        bytes_accessed=(m_pad * K * 2          # bf16 patch stream
                        + oc_pad * K * 2       # resident bf16 weight
                        + oc_pad * 4           # bias
                        + 3 * M * OC * 4),     # f32 out write + wrapper read/write
    )

    # Double-buffered patch + output tiles, plus resident weight/bias; clamp to
    # <= 75% of this chip's VMEM (v7x has only 64 MiB per TensorCore).
    vmem_need = 2 * (K * tm * 2 + oc_pad * tm * 4) + oc_pad * K * 2 + oc_pad * 4
    vmem_limit = int(min(int(0.75 * vmem_cap),
                         max(2 * vmem_need, 32 * 1024 * 1024)))

    out = pl.pallas_call(
        _conv_gemm_kernel,
        out_shape=jax.ShapeDtypeStruct((oc_pad, m_pad), jnp.float32),
        grid_spec=pltpu.PrefetchScalarGridSpec(
            num_scalar_prefetch=0,
            grid=(n_steps,),
            in_specs=[
                pl.BlockSpec((K, tm), lambda i: (0, i)),        # streamed patches^T
                pl.BlockSpec((oc_pad, K), lambda i: (0, 0)),    # resident weight
                pl.BlockSpec((oc_pad, 1), lambda i: (0, 0)),    # resident bias
            ],
            out_specs=pl.BlockSpec((oc_pad, tm), lambda i: (0, i)),
        ),
        compiler_params=pltpu.CompilerParams(
            dimension_semantics=("parallel",),
            vmem_limit_bytes=vmem_limit),
        cost_estimate=cost,
    )(patches_t, w_p, b_p)

    return out[:OC, :M]


# -----------------------------------------------------------------------------
# Glue: spectral norm (1 power iteration, as in the classic SpectralNorm class)
# -----------------------------------------------------------------------------
def _l2normalize(v, eps=1e-12):
    return v / (jnp.linalg.norm(v) + eps)


def spectral_normalize_weight(w, u):
    """w: (out_c, in_c, k, k), u: (out_c,). One power iteration, return w / sigma."""
    out_c = w.shape[0]
    w_mat = w.reshape(out_c, -1)                              # (out_c, K)
    v = lax.stop_gradient(_l2normalize(w_mat.T @ u))          # (K,)
    u_new = lax.stop_gradient(_l2normalize(w_mat @ v))        # (out_c,)
    sigma = u_new @ (w_mat @ v)
    return w / sigma
    # TODO(synk): PyTorch's SpectralNorm also persists the updated u buffer
    # in-place during training; this functional forward does not return it.


# -----------------------------------------------------------------------------
# Glue: transposed im2col. Input is pre-transposed ONCE to (C, N, H, W) so the
# patch tensor is written straight in (c, di, dj) x (n, oh, ow) order — no XLA
# transpose of the 4x-expanded tensor.
# -----------------------------------------------------------------------------
def im2col_t(x_t, k, s):
    C, N, H, W = x_t.shape
    OH = (H - k) // s + 1
    OW = (W - k) // s + 1
    cols = []
    for di in range(k):
        for dj in range(k):
            cols.append(x_t[:, :, di:di + s * OH:s, dj:dj + s * OW:s])  # (C,N,OH,OW)
    p = jnp.stack(cols, axis=1)                     # (C, k*k, N, OH, OW)
    return p.reshape(C * k * k, N * OH * OW), OH, OW


# -----------------------------------------------------------------------------
# Module forward: SpectralNorm(Conv2d, VALID, stride 2) -> LeakyReLU(0.2)
# -----------------------------------------------------------------------------
@functools.partial(jax.jit, static_argnames=("kernel_size", "stride"))
def spectral_conv_unit_forward(x, weight, bias, u, *, kernel_size=4, stride=2):
    """x: (N, in_c, H, W); weight: (out_c, in_c, k, k); bias: (out_c,); u: (out_c,)."""
    N = x.shape[0]
    out_c = weight.shape[0]
    k, s = kernel_size, stride

    w_sn = spectral_normalize_weight(weight.astype(jnp.float32),
                                     u.astype(jnp.float32))    # (OC, C, k, k) f32
    w_flat = w_sn.reshape(out_c, -1)                            # (OC, K), K=(c,di,dj)

    # TODO(synk): fully fuse the patch gather (manual strided DMA from HBM per
    # (di,dj) shift with an in-kernel f32 accumulator) to also remove the
    # remaining patch write+read round trip; patches stream in bf16 for now.
    x_t = x.transpose(1, 0, 2, 3).astype(jnp.bfloat16)          # (C, N, H, W), 1x input
    patches_t, OH, OW = im2col_t(x_t, k, s)                     # (K, M) bf16

    out_2d = conv_gemm_pallas(patches_t, w_flat,
                              bias.astype(jnp.float32))         # (OC, M) f32

    # (OC, N*OH*OW) -> NCHW: permutes only the two small leading axes; the
    # contiguous OH*OW inner block makes this a near-free copy of the real output.
    return out_2d.reshape(out_c, N, OH, OW).transpose(1, 0, 2, 3)


# -----------------------------------------------------------------------------
# Pure-JAX reference (for correctness check)
# -----------------------------------------------------------------------------
def reference_forward(x, weight, bias, u, *, kernel_size=4, stride=2,
                      compute_dtype=jnp.float32):
    w_sn = spectral_normalize_weight(weight.astype(jnp.float32),
                                     u.astype(jnp.float32))
    y = lax.conv_general_dilated(
        x.astype(compute_dtype), w_sn.astype(compute_dtype),
        window_strides=(stride, stride), padding="VALID",
        dimension_numbers=("NCHW", "OIHW", "NCHW"),
        preferred_element_type=jnp.float32)
    y = y + bias.reshape(1, -1, 1, 1).astype(jnp.float32)
    return jnp.where(y >= 0.0, y, 0.2 * y)


if __name__ == "__main__":
    key = jax.random.PRNGKey(0)
    k_x, k_w, k_b, k_u = jax.random.split(key, 4)

    # small shapes consistent with the module
    N, in_c, H, W = 2, 4, 16, 16
    out_c, ksz, stride = 8, 4, 2

    x = jax.random.normal(k_x, (N, in_c, H, W), dtype=jnp.float32)
    weight = jax.random.normal(k_w, (out_c, in_c, ksz, ksz), dtype=jnp.float32) * 0.1
    bias = jax.random.normal(k_b, (out_c,), dtype=jnp.float32) * 0.1
    u = jax.random.normal(k_u, (out_c,), dtype=jnp.float32)  # SN power-iteration vector

    out = spectral_conv_unit_forward(x, weight, bias, u,
                                     kernel_size=ksz, stride=stride)
    out = jax.block_until_ready(out)

    OH = (H - ksz) // stride + 1
    OW = (W - ksz) // stride + 1
    assert out.shape == (N, out_c, OH, OW)

    # check vs full-f32 reference (loose: kernel streams bf16, accumulates f32)
    ref_f32 = reference_forward(x, weight, bias, u, kernel_size=ksz, stride=stride)
    assert jnp.allclose(out, ref_f32, atol=1e-2, rtol=1e-2), (
        float(jnp.max(jnp.abs(out - ref_f32))))

    # check vs bf16-input reference (tight: same streaming precision)
    ref_bf16 = reference_forward(x, weight, bias, u, kernel_size=ksz, stride=stride,
                                 compute_dtype=jnp.bfloat16)
    assert jnp.allclose(out, ref_bf16, atol=5e-3, rtol=5e-3), (
        float(jnp.max(jnp.abs(out - ref_bf16))))

    print("KERNEL_OK")
</pallas_src>

<mosaic_0001>
module attributes {stable_mosaic.version = 11 : i64} {
  func.func @_conv_gemm_kernel(%arg0: i32, %arg1: memref<64x128xbf16, #tpu.memory_space<vmem>>, %arg2: memref<8x64xbf16, #tpu.memory_space<vmem>>, %arg3: memref<8x1xf32, #tpu.memory_space<vmem>>, %arg4: memref<8x128xf32, #tpu.memory_space<vmem>>) attributes {dimension_semantics = [#tpu.dimension_semantics<parallel>], iteration_bounds = array<i64: 1>, scalar_prefetch = 0 : i64, scratch_operands = 0 : i64, tpu.core_type = #tpu.core_type<tc>, window_params = [{transform_indices = @transform_0, window_bounds = array<i64: 64, 128>}, {pipeline_mode = #tpu.pipeline_mode<synchronous>, transform_indices = @transform_1, window_bounds = array<i64: 8, 64>}, {pipeline_mode = #tpu.pipeline_mode<synchronous>, transform_indices = @transform_2, window_bounds = array<i64: 8, 1>}, {transform_indices = @transform_3, window_bounds = array<i64: 8, 128>}]} {
    %c0 = arith.constant 0 : index
    %c0_0 = arith.constant 0 : index
    %0 = vector.load %arg2[%c0, %c0_0] : memref<8x64xbf16, #tpu.memory_space<vmem>>, vector<8x64xbf16>
    %c0_1 = arith.constant 0 : index
    %c0_2 = arith.constant 0 : index
    %1 = vector.load %arg1[%c0_1, %c0_2] : memref<64x128xbf16, #tpu.memory_space<vmem>>, vector<64x128xbf16>
    %cst = arith.constant dense<0.000000e+00> : vector<8x128xf32>
    %2 = tpu.matmul %0, %1, %cst {dimension_numbers = #tpu.dot_dimension_numbers<[1], [0], [0], [1], [0, 0, 1, 1], [], []>} : vector<8x64xbf16>, vector<64x128xbf16>, vector<8x128xf32> -> vector<8x128xf32>
    %c0_3 = arith.constant 0 : index
    %c0_4 = arith.constant 0 : index
    %3 = vector.load %arg3[%c0_3, %c0_4] : memref<8x1xf32, #tpu.memory_space<vmem>>, vector<8x1xf32>
    %4 = vector.broadcast %3 : vector<8x1xf32> to vector<8x128xf32>
    %5 = arith.addf %2, %4 : vector<8x128xf32>
    %cst_5 = arith.constant 0.000000e+00 : f32
    %6 = vector.broadcast %cst_5 : f32 to vector<8x128xf32>
    %7 = arith.cmpf oge, %5, %6 : vector<8x128xf32>
    %cst_6 = arith.constant 2.000000e-01 : f32
    %8 = vector.broadcast %cst_6 : f32 to vector<8x128xf32>
    %9 = arith.mulf %8, %5 : vector<8x128xf32>
    %10 = arith.select %7, %5, %9 : vector<8x128xi1>, vector<8x128xf32>
    %c0_7 = arith.constant 0 : index
    %c0_8 = arith.constant 0 : index
    %11 = vector.load %arg4[%c0_7, %c0_8] : memref<8x128xf32, #tpu.memory_space<vmem>>, vector<8x128xf32>
    tpu.vector_store %arg4[%c0_7, %c0_8], %10 {strides = array<i32>} : memref<8x128xf32, #tpu.memory_space<vmem>>, vector<8x128xf32>,
    return
  }
  func.func @transform_0(%arg0: i32) -> (i32, i32) {
    %c0_i32 = arith.constant 0 : i32
    %c0_i32_0 = arith.constant 0 : i32
    return %c0_i32, %arg0 : i32, i32
  }
  func.func @transform_1(%arg0: i32) -> (i32, i32) {
    %c0_i32 = arith.constant 0 : i32
    %c0_i32_0 = arith.constant 0 : i32
    %c0_i32_1 = arith.constant 0 : i32
    return %c0_i32, %c0_i32_0 : i32, i32
  }
  func.func @transform_2(%arg0: i32) -> (i32, i32) {
    %c0_i32 = arith.constant 0 : i32
    %c0_i32_0 = arith.constant 0 : i32
    %c0_i32_1 = arith.constant 0 : i32
    return %c0_i32, %c0_i32_0 : i32, i32
  }
  func.func @transform_3(%arg0: i32) -> (i32, i32) {
    %c0_i32 = arith.constant 0 : i32
    %c0_i32_0 = arith.constant 0 : i32
    return %c0_i32, %arg0 : i32, i32
  }
}

</mosaic_0001>

<bundles_post_ra>
// kernel: spectral_conv_unit_forward.1
= control target key start
LH: loop header
LB: loop body
LE: loop exit
PB: predicated region body
PF: predicated region fallthrough
CT: control target
= control target key end

     0   :  { %v102_v1 = vmov 0   ;;  %vm54_vm0 = vcmask 523264   ;;  %s144_s0 = inlined_call_operand.vmem [shape: bf16[64,128], index: 0, kind: input, shape index: {}]   ;;  %s145_s2 = inlined_call_operand.vmem [shape: f32[8,1], index: 2, kind: input, shape index: {}]   ;;  %s146_s1 = inlined_call_operand.vmem [shape: bf16[8,64], index: 1, kind: input, shape index: {}]   ;;  %s147_s3 = inlined_call_operand.vmem [shape: f32[8,128], index: 3, kind: output, shape index: {}]  }
   0x1   :  { %v99_v0 = vld [vmem:[%s144_s0 + $0x18] sm:$0xff]  ;;  %101 = vset.pattern.permute.xlu0 %v102_v1  ;;  %v24_v2 = vld [vmem:[%s145_s2] sm:$0xff]  ;;  %v98_v3 = vld [vmem:[%s144_s0 + $0x10] sm:$0xff] }
   0x2   :  { %62 = vmatpush.bf16.msra.mxu0 %v99_v0  ;;  %27 = vperm.xlu0 %101, %v24_v2   ;;  %v97_v4 = vld [vmem:[%s144_s0 + $0x8] sm:$0xff]  ;;  %v96_v5 = vld [vmem:[%s144_s0] sm:$0xff] }
   0x3   :  { %v15_v6 = vld [vmem:[%s146_s1] sm:$0xf] }
   0x6   :  { %63 = vmatpush.bf16.msra.mxu0 %v98_v3 }
   0xa   :  { %64 = vmatpush.bf16.msra.mxu0 %v97_v4 }
   0xe   :  { %65 = vmatpush.bf16.msra.mxu0 %v96_v5 }
  0x11   :  { %95 = vmatmul.msk.bf16.vlgmr.msra.gmra.mxu0 %vm54_vm0, %v15_v6 }
  0x74   :  { %v28_v7 = vpop.permute.xlu0 %27 }
  0x8e   :  { %v67_v8 = vpop.f32.mrf.mxu0 }
  0x8f   :  { %v68_v9 = vadd.f32 %v67_v8, %v28_v7 }
  0x91   :  { %vm71_vm1 = vcmp.ge.f32.partialorder %v68_v9, 0.0  ;;  %v72_v10 = vmul.f32 0.2, %v68_v9 }
  0x93   :  { %v73_v11 = vsel %vm71_vm1, %v68_v9, %v72_v10 }
  0x94   :  { %74 = vst [vmem:[%s147_s3] sm:$0xff] %v73_v11 }
  0x96   :  { %v69_v12 = vpop.f32.mrf.mxu0 }

</bundles_post_ra>
